<compile_context>
chip_gen: v6e
topology: v6e:2x2x1
jax: 0.10.0
libtpu: 0.0.40
codegen_flags: <defaults>
</compile_context>

<pallas_src>
import functools

import jax
import jax.numpy as jnp
from jax.experimental import pallas as pl
from jax.experimental.pallas import tpu as pltpu


def _dw_pw_kernel(xflat_ref, dww_ref, dwb_ref, pww_ref, pwb_ref, out_ref,
                  *, H, W, K, C, Wp, dil):
    """One batch image per grid step.

    xflat_ref : (1, C, Hp_e*Wp)  flattened reflection-padded image (VMEM)
    dww_ref   : (C, K*K)         depthwise weights (channel on sublanes)
    dwb_ref   : (C, 1)           depthwise bias
    pww_ref   : (C, C)           pointwise weights (C_out, C_in)
    pwb_ref   : (C, 1)           pointwise bias
    out_ref   : (1, C, H*Wp)     output on the padded-width row grid
    """
    HWp = H * Wp

    # ---- hoisted weight/bias loads (single load each; nothing re-read per tap) ----
    dww = dww_ref[...].astype(jnp.float32)          # (C, K*K)
    dwb = dwb_ref[...].astype(jnp.float32)          # (C, 1)
    pww = pww_ref[...].astype(jnp.float32)          # (C, C)
    pwb = pwb_ref[...].astype(jnp.float32)          # (C, 1)

    # ---- depthwise dilated conv: K*K taps, each a contiguous lane slab ----
    acc = jnp.zeros((C, HWp), dtype=jnp.float32)
    for i in range(K):
        for j in range(K):
            off = dil * i * Wp + dil * j            # static lane offset
            tap = xflat_ref[0, :, off:off + HWp].astype(jnp.float32)   # (C, H*Wp)
            acc = acc + tap * dww[:, i * K + j:i * K + j + 1]

    # ---- bias + ReLU (lane-dense (C, H*Wp)) ----
    conv1 = jnp.maximum(acc + dwb, 0.0)

    # ---- pointwise 1x1 conv over channels ----
    if C <= 32:
        # Small C: unrolled VPU FMAs (outer-product accumulation); the MXU would
        # be <1% utilized at this contraction size and just add push/pop latency.
        res = pww[:, 0:1] * conv1[0:1, :]
        for ci in range(1, C):
            res = res + pww[:, ci:ci + 1] * conv1[ci:ci + 1, :]
    else:
        # Large C: feed the MXU with a lane-dense (C, H*Wp) activation slab.
        res = jnp.dot(pww, conv1, preferred_element_type=jnp.float32)
    res = res + pwb

    # ---- sigmoid (EUP) + dense store ----
    out_ref[0] = jax.nn.sigmoid(res).astype(out_ref.dtype)


def depthwise_conv_pallas(x_nchw, dw_w, dw_b, pw_w, pw_b, kernel_size):
    """Forward pass of the PyTorch `depthwise_conv` module.

    x_nchw : (N, C, H, W)  float32
    dw_w   : (C, 1, K, K)  depthwise conv weight (torch layout)
    dw_b   : (C,)          depthwise conv bias
    pw_w   : (C, C, 1, 1)  pointwise conv weight (torch layout)
    pw_b   : (C,)          pointwise conv bias
    returns: (N, C, H, W)
    """
    N, C, H, W = x_nchw.shape
    K = int(kernel_size)
    dil = 2
    assert K % 2 == 1, "module semantics assume odd kernel_size"
    p = dil * (K // 2)                      # == 2 * (K // 2), as in the module
    assert H >= p + 2 and W >= p + 1, "spatial dims too small for reflection pad"
    Wp = W + 2 * p
    Hp_e = H + 2 * p + 1                    # +1 extra bottom row so every tap slab
                                            # of length H*Wp stays in bounds

    # Glue: reflection pad (stays NCHW) + free flatten of the spatial dims.
    xpad = jnp.pad(x_nchw, ((0, 0), (0, 0), (p, p + 1), (p, p)), mode="reflect")
    xflat = xpad.reshape(N, C, Hp_e * Wp)

    # Tiny host-side weight re-layouts: channel axis on sublanes, taps on lanes.
    dww = dw_w[:, 0].reshape(C, K * K)      # (C, K*K)
    dwb = dw_b.reshape(C, 1)
    pww = pw_w[:, :, 0, 0]                  # (C_out, C_in)
    pwb = pw_b.reshape(C, 1)

    kernel = functools.partial(_dw_pw_kernel, H=H, W=W, K=K, C=C, Wp=Wp, dil=dil)

    # Explicit VMEM budget: double-buffered input block + output block + weights.
    def _tile_bytes(r, c):
        return ((r + 7) // 8) * 8 * ((c + 127) // 128) * 128 * 4
    need = (2 * _tile_bytes(C, Hp_e * Wp) + 2 * _tile_bytes(C, H * Wp)
            + 4 * _tile_bytes(C, max(C, K * K)))
    vmem_limit = int(max(32 * 1024 * 1024, min(2 * need, 100 * 1024 * 1024)))

    # TODO(synk): for production-size images (large H / C) tile the grid over H rows
    # with a dil*(K//2)-row halo so per-step blocks fit v7x's 64 MiB VMEM and both
    # v7x TensorCores get a deep pipeline; at these toy sizes grid=(N,) is enough.
    out_flat = pl.pallas_call(
        kernel,
        out_shape=jax.ShapeDtypeStruct((N, C, H * Wp), x_nchw.dtype),
        grid_spec=pltpu.PrefetchScalarGridSpec(
            num_scalar_prefetch=0,
            grid=(N,),
            in_specs=[
                pl.BlockSpec((1, C, Hp_e * Wp), lambda n: (n, 0, 0)),
                pl.BlockSpec(memory_space=pltpu.MemorySpace.VMEM),  # dww
                pl.BlockSpec(memory_space=pltpu.MemorySpace.VMEM),  # dwb
                pl.BlockSpec(memory_space=pltpu.MemorySpace.VMEM),  # pww
                pl.BlockSpec(memory_space=pltpu.MemorySpace.VMEM),  # pwb
            ],
            out_specs=pl.BlockSpec((1, C, H * Wp), lambda n: (n, 0, 0)),
        ),
        compiler_params=pltpu.CompilerParams(
            dimension_semantics=("parallel",),
            vmem_limit_bytes=vmem_limit),
    )(xflat, dww, dwb, pww, pwb)

    # Drop the throw-away padded-width columns (w >= W) of each row: a free
    # bitcast reshape + one contiguous slice. No transposes anywhere.
    return out_flat.reshape(N, C, H, Wp)[:, :, :, :W]


def _reference_forward(x_nchw, dw_w, dw_b, pw_w, pw_b, kernel_size):
    """Pure-JAX reference matching the PyTorch module (for verification)."""
    N, C, H, W = x_nchw.shape
    K = kernel_size
    p = 2 * (K // 2)
    xpad = jnp.pad(x_nchw, ((0, 0), (0, 0), (p, p), (p, p)), mode="reflect")
    dn = jax.lax.conv_dimension_numbers(xpad.shape, dw_w.shape,
                                        ("NCHW", "OIHW", "NCHW"))
    conv1 = jax.lax.conv_general_dilated(
        xpad, dw_w, window_strides=(1, 1), padding="VALID",
        rhs_dilation=(2, 2), dimension_numbers=dn, feature_group_count=C)
    conv1 = jax.nn.relu(conv1 + dw_b[None, :, None, None])
    dn2 = jax.lax.conv_dimension_numbers(conv1.shape, pw_w.shape,
                                         ("NCHW", "OIHW", "NCHW"))
    conv2 = jax.lax.conv_general_dilated(
        conv1, pw_w, window_strides=(1, 1), padding="VALID",
        dimension_numbers=dn2)
    conv2 = conv2 + pw_b[None, :, None, None]
    return jax.nn.sigmoid(conv2)


if __name__ == "__main__":
    N, C, H, W = 2, 4, 16, 16
    K = 3

    key = jax.random.PRNGKey(0)
    kx, k1, k2, k3, k4 = jax.random.split(key, 5)

    x = jax.random.normal(kx, (N, C, H, W), dtype=jnp.float32)
    # Deterministic parameter init (shapes follow the torch module's __init__).
    dw_w = jax.random.normal(k1, (C, 1, K, K), dtype=jnp.float32) * 0.1
    dw_b = jax.random.normal(k2, (C,), dtype=jnp.float32) * 0.1
    pw_w = jax.random.normal(k3, (C, C, 1, 1), dtype=jnp.float32) * 0.1
    pw_b = jax.random.normal(k4, (C,), dtype=jnp.float32) * 0.1

    out = depthwise_conv_pallas(x, dw_w, dw_b, pw_w, pw_b, K)
    out = jax.block_until_ready(out)

    ref = _reference_forward(x, dw_w, dw_b, pw_w, pw_b, K)
    assert out.shape == (N, C, H, W)
    assert jnp.max(jnp.abs(out - ref)) < 2e-5

    print("KERNEL_OK")
</pallas_src>

<mosaic_0001>
module attributes {stable_mosaic.version = 11 : i64} {
  func.func @_dw_pw_kernel(%arg0: i32, %arg1: memref<1x4x420xf32, #tpu.memory_space<vmem>>, %arg2: memref<4x9xf32, #tpu.memory_space<vmem>>, %arg3: memref<4x1xf32, #tpu.memory_space<vmem>>, %arg4: memref<4x4xf32, #tpu.memory_space<vmem>>, %arg5: memref<4x1xf32, #tpu.memory_space<vmem>>, %arg6: memref<1x4x320xf32, #tpu.memory_space<vmem>>) attributes {dimension_semantics = [#tpu.dimension_semantics<parallel>], iteration_bounds = array<i64: 2>, scalar_prefetch = 0 : i64, scratch_operands = 0 : i64, tpu.core_type = #tpu.core_type<tc>, window_params = [{transform_indices = @transform_0, window_bounds = array<i64: 1, 4, 420>}, {pipeline_mode = #tpu.pipeline_mode<synchronous>, transform_indices = @transform_1, window_bounds = array<i64: 4, 9>}, {pipeline_mode = #tpu.pipeline_mode<synchronous>, transform_indices = @transform_2, window_bounds = array<i64: 4, 1>}, {pipeline_mode = #tpu.pipeline_mode<synchronous>, transform_indices = @transform_3, window_bounds = array<i64: 4, 4>}, {pipeline_mode = #tpu.pipeline_mode<synchronous>, transform_indices = @transform_4, window_bounds = array<i64: 4, 1>}, {transform_indices = @transform_5, window_bounds = array<i64: 1, 4, 320>}]} {
    %c0 = arith.constant 0 : index
    %c0_0 = arith.constant 0 : index
    %0 = vector.load %arg2[%c0, %c0_0] : memref<4x9xf32, #tpu.memory_space<vmem>>, vector<4x9xf32>
    %c0_1 = arith.constant 0 : index
    %c0_2 = arith.constant 0 : index
    %1 = vector.load %arg3[%c0_1, %c0_2] : memref<4x1xf32, #tpu.memory_space<vmem>>, vector<4x1xf32>
    %c0_3 = arith.constant 0 : index
    %c0_4 = arith.constant 0 : index
    %2 = vector.load %arg4[%c0_3, %c0_4] : memref<4x4xf32, #tpu.memory_space<vmem>>, vector<4x4xf32>
    %c0_5 = arith.constant 0 : index
    %c0_6 = arith.constant 0 : index
    %3 = vector.load %arg5[%c0_5, %c0_6] : memref<4x1xf32, #tpu.memory_space<vmem>>, vector<4x1xf32>
    %cst = arith.constant 0.000000e+00 : f32
    %4 = vector.broadcast %cst : f32 to vector<4x320xf32>
    %c0_7 = arith.constant 0 : index
    %c0_8 = arith.constant 0 : index
    %c0_9 = arith.constant 0 : index
    %5 = vector.load %arg1[%c0_7, %c0_8, %c0_9] : memref<1x4x420xf32, #tpu.memory_space<vmem>>, vector<1x4x320xf32>
    %6 = vector.shape_cast %5 : vector<1x4x320xf32> to vector<4x320xf32>
    %7 = vector.extract_strided_slice %0 {offsets = [0, 0], sizes = [4, 1], strides = [1, 1]} : vector<4x9xf32> to vector<4x1xf32>
    %8 = vector.broadcast %7 : vector<4x1xf32> to vector<4x320xf32>
    %9 = arith.mulf %6, %8 : vector<4x320xf32>
    %10 = arith.addf %4, %9 : vector<4x320xf32>
    %c0_10 = arith.constant 0 : index
    %c0_11 = arith.constant 0 : index
    %c2 = arith.constant 2 : index
    %11 = vector.load %arg1[%c0_10, %c0_11, %c2] : memref<1x4x420xf32, #tpu.memory_space<vmem>>, vector<1x4x320xf32>
    %12 = vector.shape_cast %11 : vector<1x4x320xf32> to vector<4x320xf32>
    %13 = vector.extract_strided_slice %0 {offsets = [0, 1], sizes = [4, 1], strides = [1, 1]} : vector<4x9xf32> to vector<4x1xf32>
    %14 = vector.broadcast %13 : vector<4x1xf32> to vector<4x320xf32>
    %15 = arith.mulf %12, %14 : vector<4x320xf32>
    %16 = arith.addf %10, %15 : vector<4x320xf32>
    %c0_12 = arith.constant 0 : index
    %c0_13 = arith.constant 0 : index
    %c4 = arith.constant 4 : index
    %17 = vector.load %arg1[%c0_12, %c0_13, %c4] : memref<1x4x420xf32, #tpu.memory_space<vmem>>, vector<1x4x320xf32>
    %18 = vector.shape_cast %17 : vector<1x4x320xf32> to vector<4x320xf32>
    %19 = vector.extract_strided_slice %0 {offsets = [0, 2], sizes = [4, 1], strides = [1, 1]} : vector<4x9xf32> to vector<4x1xf32>
    %20 = vector.broadcast %19 : vector<4x1xf32> to vector<4x320xf32>
    %21 = arith.mulf %18, %20 : vector<4x320xf32>
    %22 = arith.addf %16, %21 : vector<4x320xf32>
    %c0_14 = arith.constant 0 : index
    %c0_15 = arith.constant 0 : index
    %c40 = arith.constant 40 : index
    %23 = vector.load %arg1[%c0_14, %c0_15, %c40] : memref<1x4x420xf32, #tpu.memory_space<vmem>>, vector<1x4x320xf32>
    %24 = vector.shape_cast %23 : vector<1x4x320xf32> to vector<4x320xf32>
    %25 = vector.extract_strided_slice %0 {offsets = [0, 3], sizes = [4, 1], strides = [1, 1]} : vector<4x9xf32> to vector<4x1xf32>
    %26 = vector.broadcast %25 : vector<4x1xf32> to vector<4x320xf32>
    %27 = arith.mulf %24, %26 : vector<4x320xf32>
    %28 = arith.addf %22, %27 : vector<4x320xf32>
    %c0_16 = arith.constant 0 : index
    %c0_17 = arith.constant 0 : index
    %c42 = arith.constant 42 : index
    %29 = vector.load %arg1[%c0_16, %c0_17, %c42] : memref<1x4x420xf32, #tpu.memory_space<vmem>>, vector<1x4x320xf32>
    %30 = vector.shape_cast %29 : vector<1x4x320xf32> to vector<4x320xf32>
    %31 = vector.extract_strided_slice %0 {offsets = [0, 4], sizes = [4, 1], strides = [1, 1]} : vector<4x9xf32> to vector<4x1xf32>
    %32 = vector.broadcast %31 : vector<4x1xf32> to vector<4x320xf32>
    %33 = arith.mulf %30, %32 : vector<4x320xf32>
    %34 = arith.addf %28, %33 : vector<4x320xf32>
    %c0_18 = arith.constant 0 : index
    %c0_19 = arith.constant 0 : index
    %c44 = arith.constant 44 : index
    %35 = vector.load %arg1[%c0_18, %c0_19, %c44] : memref<1x4x420xf32, #tpu.memory_space<vmem>>, vector<1x4x320xf32>
    %36 = vector.shape_cast %35 : vector<1x4x320xf32> to vector<4x320xf32>
    %37 = vector.extract_strided_slice %0 {offsets = [0, 5], sizes = [4, 1], strides = [1, 1]} : vector<4x9xf32> to vector<4x1xf32>
    %38 = vector.broadcast %37 : vector<4x1xf32> to vector<4x320xf32>
    %39 = arith.mulf %36, %38 : vector<4x320xf32>
    %40 = arith.addf %34, %39 : vector<4x320xf32>
    %c0_20 = arith.constant 0 : index
    %c0_21 = arith.constant 0 : index
    %c80 = arith.constant 80 : index
    %41 = vector.load %arg1[%c0_20, %c0_21, %c80] : memref<1x4x420xf32, #tpu.memory_space<vmem>>, vector<1x4x320xf32>
    %42 = vector.shape_cast %41 : vector<1x4x320xf32> to vector<4x320xf32>
    %43 = vector.extract_strided_slice %0 {offsets = [0, 6], sizes = [4, 1], strides = [1, 1]} : vector<4x9xf32> to vector<4x1xf32>
    %44 = vector.broadcast %43 : vector<4x1xf32> to vector<4x320xf32>
    %45 = arith.mulf %42, %44 : vector<4x320xf32>
    %46 = arith.addf %40, %45 : vector<4x320xf32>
    %c0_22 = arith.constant 0 : index
    %c0_23 = arith.constant 0 : index
    %c82 = arith.constant 82 : index
    %47 = vector.load %arg1[%c0_22, %c0_23, %c82] : memref<1x4x420xf32, #tpu.memory_space<vmem>>, vector<1x4x320xf32>
    %48 = vector.shape_cast %47 : vector<1x4x320xf32> to vector<4x320xf32>
    %49 = vector.extract_strided_slice %0 {offsets = [0, 7], sizes = [4, 1], strides = [1, 1]} : vector<4x9xf32> to vector<4x1xf32>
    %50 = vector.broadcast %49 : vector<4x1xf32> to vector<4x320xf32>
    %51 = arith.mulf %48, %50 : vector<4x320xf32>
    %52 = arith.addf %46, %51 : vector<4x320xf32>
    %c0_24 = arith.constant 0 : index
    %c0_25 = arith.constant 0 : index
    %c84 = arith.constant 84 : index
    %53 = vector.load %arg1[%c0_24, %c0_25, %c84] : memref<1x4x420xf32, #tpu.memory_space<vmem>>, vector<1x4x320xf32>
    %54 = vector.shape_cast %53 : vector<1x4x320xf32> to vector<4x320xf32>
    %55 = vector.extract_strided_slice %0 {offsets = [0, 8], sizes = [4, 1], strides = [1, 1]} : vector<4x9xf32> to vector<4x1xf32>
    %56 = vector.broadcast %55 : vector<4x1xf32> to vector<4x320xf32>
    %57 = arith.mulf %54, %56 : vector<4x320xf32>
    %58 = arith.addf %52, %57 : vector<4x320xf32>
    %59 = vector.broadcast %1 : vector<4x1xf32> to vector<4x320xf32>
    %60 = arith.addf %58, %59 : vector<4x320xf32>
    %cst_26 = arith.constant 0.000000e+00 : f32
    %61 = vector.broadcast %cst_26 : f32 to vector<4x320xf32>
    %62 = arith.maximumf %60, %61 : vector<4x320xf32>
    %63 = vector.extract_strided_slice %2 {offsets = [0, 0], sizes = [4, 1], strides = [1, 1]} : vector<4x4xf32> to vector<4x1xf32>
    %64 = vector.extract_strided_slice %62 {offsets = [0, 0], sizes = [1, 320], strides = [1, 1]} : vector<4x320xf32> to vector<1x320xf32>
    %65 = vector.broadcast %63 : vector<4x1xf32> to vector<4x320xf32>
    %66 = vector.broadcast %64 : vector<1x320xf32> to vector<4x320xf32>
    %67 = arith.mulf %65, %66 : vector<4x320xf32>
    %68 = vector.extract_strided_slice %2 {offsets = [0, 1], sizes = [4, 1], strides = [1, 1]} : vector<4x4xf32> to vector<4x1xf32>
    %69 = vector.extract_strided_slice %62 {offsets = [1, 0], sizes = [1, 320], strides = [1, 1]} : vector<4x320xf32> to vector<1x320xf32>
    %70 = vector.broadcast %68 : vector<4x1xf32> to vector<4x320xf32>
    %71 = vector.broadcast %69 : vector<1x320xf32> to vector<4x320xf32>
    %72 = arith.mulf %70, %71 : vector<4x320xf32>
    %73 = arith.addf %67, %72 : vector<4x320xf32>
    %74 = vector.extract_strided_slice %2 {offsets = [0, 2], sizes = [4, 1], strides = [1, 1]} : vector<4x4xf32> to vector<4x1xf32>
    %75 = vector.extract_strided_slice %62 {offsets = [2, 0], sizes = [1, 320], strides = [1, 1]} : vector<4x320xf32> to vector<1x320xf32>
    %76 = vector.broadcast %74 : vector<4x1xf32> to vector<4x320xf32>
    %77 = vector.broadcast %75 : vector<1x320xf32> to vector<4x320xf32>
    %78 = arith.mulf %76, %77 : vector<4x320xf32>
    %79 = arith.addf %73, %78 : vector<4x320xf32>
    %80 = vector.extract_strided_slice %2 {offsets = [0, 3], sizes = [4, 1], strides = [1, 1]} : vector<4x4xf32> to vector<4x1xf32>
    %81 = vector.extract_strided_slice %62 {offsets = [3, 0], sizes = [1, 320], strides = [1, 1]} : vector<4x320xf32> to vector<1x320xf32>
    %82 = vector.broadcast %80 : vector<4x1xf32> to vector<4x320xf32>
    %83 = vector.broadcast %81 : vector<1x320xf32> to vector<4x320xf32>
    %84 = arith.mulf %82, %83 : vector<4x320xf32>
    %85 = arith.addf %79, %84 : vector<4x320xf32>
    %86 = vector.broadcast %3 : vector<4x1xf32> to vector<4x320xf32>
    %87 = arith.addf %85, %86 : vector<4x320xf32>
    %88 = arith.negf %87 : vector<4x320xf32>
    %89 = math.exp %88 : vector<4x320xf32>
    %cst_27 = arith.constant 1.000000e+00 : f32
    %90 = vector.broadcast %cst_27 : f32 to vector<4x320xf32>
    %91 = arith.addf %90, %89 : vector<4x320xf32>
    %92 = arith.divf %90, %91 : vector<4x320xf32>
    %c0_28 = arith.constant 0 : index
    %c0_29 = arith.constant 0 : index
    %c0_30 = arith.constant 0 : index
    %93 = vector.load %arg6[%c0_28, %c0_29, %c0_30] : memref<1x4x320xf32, #tpu.memory_space<vmem>>, vector<1x4x320xf32>
    %94 = vector.shape_cast %93 : vector<1x4x320xf32> to vector<4x320xf32>
    %95 = vector.shape_cast %92 : vector<4x320xf32> to vector<1x4x320xf32>
    tpu.vector_store %arg6[%c0_28, %c0_29, %c0_30], %95 {strides = array<i32>} : memref<1x4x320xf32, #tpu.memory_space<vmem>>, vector<1x4x320xf32>,
    return
  }
  func.func @transform_0(%arg0: i32) -> (i32, i32, i32) {
    %c0_i32 = arith.constant 0 : i32
    %c0_i32_0 = arith.constant 0 : i32
    %c0_i32_1 = arith.constant 0 : i32
    return %arg0, %c0_i32, %c0_i32_0 : i32, i32, i32
  }
  func.func @transform_1(%arg0: i32) -> (i32, i32) {
    %c0_i32 = arith.constant 0 : i32
    %c0_i32_0 = arith.constant 0 : i32
    %c0_i32_1 = arith.constant 0 : i32
    return %c0_i32, %c0_i32_0 : i32, i32
  }
  func.func @transform_2(%arg0: i32) -> (i32, i32) {
    %c0_i32 = arith.constant 0 : i32
    %c0_i32_0 = arith.constant 0 : i32
    %c0_i32_1 = arith.constant 0 : i32
    return %c0_i32, %c0_i32_0 : i32, i32
  }
  func.func @transform_3(%arg0: i32) -> (i32, i32) {
    %c0_i32 = arith.constant 0 : i32
    %c0_i32_0 = arith.constant 0 : i32
    %c0_i32_1 = arith.constant 0 : i32
    return %c0_i32, %c0_i32_0 : i32, i32
  }
  func.func @transform_4(%arg0: i32) -> (i32, i32) {
    %c0_i32 = arith.constant 0 : i32
    %c0_i32_0 = arith.constant 0 : i32
    %c0_i32_1 = arith.constant 0 : i32
    return %c0_i32, %c0_i32_0 : i32, i32
  }
  func.func @transform_5(%arg0: i32) -> (i32, i32, i32) {
    %c0_i32 = arith.constant 0 : i32
    %c0_i32_0 = arith.constant 0 : i32
    %c0_i32_1 = arith.constant 0 : i32
    return %arg0, %c0_i32, %c0_i32_0 : i32, i32, i32
  }
}

</mosaic_0001>

<bundles_post_ra>
// kernel: tpu_custom_call.1
= control target key start
LH: loop header
LB: loop body
LE: loop exit
PB: predicated region body
PF: predicated region fallthrough
CT: control target
= control target key end

     0   :  { %10 = vsyncpa [#allocation3], 0  ;;  %s1239_s0 = inlined_call_operand.hbm [shape: f32[2,4,420], index: 0, kind: input, shape index: {}]   ;;  %s1240_s1 = inlined_call_operand.vmem [shape: f32[4,9], index: 1, kind: input, shape index: {}]   ;;  %s1241_s2 = inlined_call_operand.vmem [shape: f32[4,1], index: 2, kind: input, shape index: {}]   ;;  %s1242_s3 = inlined_call_operand.vmem [shape: f32[4,4], index: 3, kind: input, shape index: {}]   ;;  %s1243_s4 = inlined_call_operand.vmem [shape: f32[4,1], index: 4, kind: input, shape index: {}]   ;;  %s1244_s5 = inlined_call_operand.hbm [shape: f32[2,4,320], index: 5, kind: output, shape index: {}]  }
   0x1   :  { %12 = vsyncpa [#allocation3 + $0x1], 0 }
   0x2   :  { %13 = vsyncpa [#allocation4], 0 }
   0x3   :  { %15 = vsyncpa [#allocation4 + $0x1], 0  ;;  %s1026_s18 = smov 0   ;;  %s1028_s19 = smov 0  }
   0x4   :  { %s1030_s20 = smov 0   ;;  %s1032_s21 = smov 0  }
   0x5 LB: > { %s1047_s22 = sadd.s32 4294967295, %s974_s21   ;;  %s775_s23 = sadd.s32 4294967294, %s974_s21   ;;  %s974_s21 = sphi %s1032_s21, %s1261_s21   ;;  %s970_s20 = sphi %s1030_s20, %s1260_s20   ;;  %s966_s19 = sphi %s1028_s19, %s1259_s19   ;;  %s962_s18 = sphi %s1026_s18, %s1258_s18  }
   0x6   : > { %s1051_s24 = sadd.s32 1, %s974_s21   ;;  %s28_s25 = sadd.s32 1, %s970_s20 }
   0x7   : > { %s25_s26 = ssub.s32 %s974_s21, %s1051_s24  ;;  %p35_p0 = scmp.ne.s32.totalorder %s970_s20, %s966_s19 }
   0x8   : > { %p26_p1 = scmp.eq.s32.totalorder %s25_s26, 0  ;;  %p36_p2 = scmp.eq.s32.totalorder %s974_s21, 0 }
   0x9   : > { %p41_p3 = scmp.ne.s32.totalorder %s966_s19, %s962_s18  ;;  %p42_p4 = scmp.eq.s32.totalorder %s1047_s22, 0 }
   0xa   : > { %s1063_s27 = scalar_select %p26_p1, %s970_s20, %s28_s25  }
   0xb   : > { %p1065_p5 = por %p36_p2, %p35_p0  ;;  %p1069_p6 = por %p42_p4, %p41_p3 }
   0xc   : > { %p149_p7 = scmp.eq.s32.totalorder %s1047_s22, 1  ;;  %p155_p8 = scmp.eq.s32.totalorder %s775_s23, 1 }
   0xd   : > { %s1248_s29 = scalar_select %p1069_p6, 1, 0 }
   0xe   : > { %p804_p10 = scmp.lt.s32.totalorder %s974_s21, 2  ;;  %p1076_p11 = por %p149_p7, %p35_p0 }
   0xf   : > { %p1080_p12 = por %p155_p8, %p41_p3  ;;  %s187_s7 = sand.u32 1, %s970_s20  }
  0x10   : > { %s1249_s30 = scalar_select %p1076_p11, 1, 0 }
  0x11   : > { %s1250_s6 = scalar_select %p1080_p12, 1, 0 }
  0x12   : > { %s789_s8 = sshll.u32 %s974_s21, 8  ;;  %s778_s9 = sshll.u32 %s187_s7, 4 }
  0x13   : > { %s1089_s12 = scalar_lea.hbm %s1239_s0, %s789_s8  ;;  %s191_s13 = scalar_lea.vmem [#allocation2], %s778_s9 }
  0x14   : > { %s199_s14 = sshll.u32 %s191_s13, 4  ;;  %p1093_p13 = pnand %p804_p10, %p1065_p5  ;;  %s1097_s14 = int_to_ptr.vmem [resolvable:$true] %s199_s14 }
  0x15   : > { %s188_s16 = scalar_lea.sflag [#allocation3], %s187_s7  ;;  %s882_s17 = scalar_lea.hbm %s1089_s12, 256 }
  0x16   : > { %p883_p2 = scmp.ne.s32.totalorder %s1089_s12, %s882_s17  ;;  %p884_p3 = pneg %p1093_p13 }
  0x17   : > { %s887_s26 = scalar_lea.hbm %s1239_s0, 512  ;;  %p888_p5 = scmp.lt.s32.totalorder %s1089_s12, %s1239_s0 }
  0x18   : > { %p885_p4 = pnand %p884_p3, %p883_p2  ;;  %p889_p8 = scmp.lt.s32.totalorder %s887_s26, %s882_s17 }
  0x1a   : > { %p886_p7 = pneg %p885_p4  ;;  %p890_p10 = por %p889_p8, %p888_p5 }
  0x1c   : > { %p891_p9 = pnand %p890_p10, %p886_p7 }
  0x1e   : > { %894 = shalt.err (!%p891_p9)
}
  0x1f   : > { %s895_s7 = scalar_lea.vmem %s1097_s14, 256  ;;  %s976_s9 = smov [#allocation2]  }
  0x20   : > { %p896_p0 = scmp.ne.s32.totalorder %s1097_s14, %s895_s7  ;;  %s900_s10 = sshll.u32 %s976_s9, 4  ;;  %s901_s10 = int_to_ptr.vmem [resolvable:$false] %s900_s10 }
  0x21   : > { %s902_s11 = scalar_lea.vmem %s901_s10, 512  ;;  %p903_p4 = scmp.lt.s32.totalorder %s1097_s14, %s901_s10 }
  0x22   : > { %p898_p1 = pnand %p896_p0, %p884_p3  ;;  %p904_p12 = scmp.lt.s32.totalorder %s902_s11, %s895_s7 }
  0x24   : > { %p899_p2 = pneg %p898_p1  ;;  %p905_p11 = por %p904_p12, %p903_p4 }
  0x26   : > { %p906_p6 = pnand %p905_p11, %p899_p2 }
  0x28   : > { %909 = shalt.err (!%p906_p6)
}
  0x29   : > { %799 = dma.hbm_to_vmem [thread:$0]  (!%p1093_p13), %s1089_s12, 256, %s1097_s14, %s188_s16  }
  0x2a   : > { %p1252_p9 = scmp.lt.s32.totalorder %s974_s21, 3  ;;  %p1253_p7 = scmp.ge.s32.totalorder %s974_s21, 1 }
  0x2c   : > { %p205_p0 = pnand %p1253_p7, %p1252_p9 }
  0x2d   : > { %s1124_s13 = sand.u32 (!%p205_p0), 1, %s966_s19   ;;  %p1254_p6 = scmp.ne.s32.totalorder (!%p205_p0), %s1248_s29, 0 }
  0x2e   : > { %208 = sbr.rel (%p205_p0) target bundleno = 406 (0x196), region = 40  ;;  %s782_s17 = sshll.u32 (!%p205_p0), %s1124_s13, 4 }
  0x2f   : > { %s211_s23 = scalar_lea.sflag (!%p205_p0), [#allocation3], %s1124_s13  ;;  %s1128_s25 = scalar_lea.vmem (!%p205_p0), [#allocation2], %s782_s17 }
  0x33   : > { %953 = dma.done.wait (%p1254_p6), %s211_s23, 256  }
  0x34   : > { %955 = vsyncadd (%p1254_p6), %s211_s23, 4294967040  ;;  %v977_v0 = vmov 1   ;;  %v978_v1 = vmov 3   ;;  %v241_v2 = vld [vmem:[%s1240_s1] sm:$0xf]  ;;  %v979_v3 = vmov 2   ;;  %v254_v13 = vlaneseq }
  0x35   : > { %856 = vset.pattern.permute.xlu0 %v977_v0  ;;  %858 = vset.pattern.permute.xlu1 %v978_v1  ;;  %v980_v4 = vmov 4   ;;  %v981_v5 = vmov 5   ;;  %v982_v6 = vmov 6   ;;  %v983_v7 = vmov 7   ;;  %v242_v9 = vld [vmem:[%s1241_s2] sm:$0xf] }
  0x36   : > { %264 = vperm.xlu0 %856, %v241_v2   ;;  %321 = vperm.xlu1 %858, %v241_v2   ;;  %v984_v8 = vmov 0   ;;  %v985_v10 = vmov 8   ;;  %v986_v11 = vmov 839922192   ;;  %v1144_v15 = vshrl.u32 %v254_v13, 7  ;;  %v245_v17 = vld [vmem:[%s1128_s25] sm:$0xff] }
  0x37   : > { %v252_v12 = vunpack.c.l.s4 %v986_v11  ;;  %v246_v22 = vld [vmem:[%s1128_s25 + $0x8] sm:$0xf]  ;;  %s987_s16 = smov 126   ;;  %s988_s26 = smov 124   ;;  %v243_v56 = vld [vmem:[%s1242_s3] sm:$0xf] }
  0x38   : > { %s989_s28 = smov 88   ;;  %s990_s8 = smov 86   ;;  %v405_v46 = vld [vmem:[%s1128_s25 + $0x8] sm:$0xff]  ;;  %v244_v57 = vld [vmem:[%s1243_s4] sm:$0xf]  ;;  %vm284_vm0 = vcmask 1043456  }
  0x39   : > { %v253_v14 = vunpack.c.0.s8 %v252_v12  ;;  %s991_s7 = smov 84   ;;  %s992_s9 = smov 48   ;;  %vm286_vm1 = vcmask 1031168   ;;  %vm314_vm2 = vcmask 1014784   ;;  %vm342_vm3 = vcmask 719872  }
  0x3a   : > { %857 = vset.pattern.permute.xlu0 %v979_v3  ;;  %859 = vset.pattern.permute.xlu1 %v980_v4  ;;  %s993_s10 = smov 46   ;;  %s994_s11 = smov 44   ;;  %vm370_vm4 = vcmask 703488   ;;  %vm428_vm5 = vcmask 392192   ;;  %vm398_vm6 = vcmask 687104   ;;  %vm457_vm7 = vcmask 375808  }
  0x3b   : > { %293 = vperm.xlu0 %857, %v241_v2   ;;  %349 = vperm.xlu1 %859, %v241_v2   ;;  %v1147_v16 = vsub.s32 %v253_v14, %v1144_v15  ;;  %vm486_vm8 = vcmask 359424   ;;  %s790_s14 = smul.u32 12, %s1124_s13  ;;  %vm688_vm9 = vcmask 519168   ;;  %p1255_p12 = scmp.ne.s32.totalorder %s1249_s30, 0 }
  0x3c   : > { %s791_s29 = smul.u32 192, %s1047_s22  ;;  %s995_s22 = smov [#allocation5]  }
  0x3d   : > { %s240_s15 = scalar_lea.vmem [#allocation5], %s790_s14 }
  0x3f   : > { %860 = vset.pattern.permute.xlu1 %v981_v5  ;;  %861 = vset.pattern.permute.xlu0 %v982_v6 }
  0x40   : > { %377 = vperm.xlu1 %860, %v241_v2   ;;  %407 = vperm.xlu0 %861, %v241_v2  }
  0x44   : > { %862 = vset.pattern.permute.xlu1 %v983_v7  ;;  %864 = vset.pattern.permute.xlu0 %v984_v8 }
  0x45   : > { %436 = vperm.xlu1 %862, %v241_v2   ;;  %249 = vperm.xlu0 %864, %v241_v2  }
  0x49   : > { %863 = vset.pattern.permute.xlu1 %v985_v10  ;;  %495 = vperm.xlu0 %864, %v242_v9  }
  0x4a   : > { %465 = vperm.xlu1 %863, %v241_v2  }
  0x4d   : > { %866 = vset.pattern.permute.xlu0 %v977_v0 }
  0x4e   : > { %865 = vset.pattern.permute.xlu1 %v984_v8 }
  0xb1   : > { %v265_v18 = vpop.permute.xlu0 %264  ;;  %v322_v19 = vpop.permute.xlu1 %321 }
  0xb2   : > { %v272_v20 = vrot.slane %v265_v18, %v1147_v16  ;;  %v329_v26 = vrot.slane %v322_v19, %v1147_v16 }
  0xb4   : > { %v274_v21 = vmul.f32 %v272_v20, %v245_v17  ;;  %v275_v27 = vmul.f32 %v272_v20, %v246_v22  ;;  %v331_v30 = vmul.f32 %v329_v26, %v245_v17  ;;  %v332_v36 = vmul.f32 %v329_v26, %v246_v22 }
  0xb6   : > { %278 = vrot.lane.b32.xlu1 %v274_v21, %s987_s16  ;;  %v294_v23 = vpop.permute.xlu0 %293  ;;  %v350_v24 = vpop.permute.xlu1 %349 }
  0xb7   : > { %v301_v25 = vrot.slane %v294_v23, %v1147_v16  ;;  %v357_v31 = vrot.slane %v350_v24, %v1147_v16 }
  0xb9   : > { %v303_v28 = vmul.f32 %v301_v25, %v245_v17  ;;  %v304_v29 = vmul.f32 %v301_v25, %v246_v22  ;;  %v359_v34 = vmul.f32 %v357_v31, %v245_v17  ;;  %v360_v39 = vmul.f32 %v357_v31, %v246_v22 }
  0xba   : > { %280 = vrot.lane.b32.xlu1 %v275_v27, %s987_s16  ;;  %s705_s16 = sshll.u32 %s240_s15, 4  ;;  %s706_s16 = int_to_ptr.vmem [resolvable:$true] %s705_s16 }
  0xbb   : > { %307 = vrot.lane.b32.xlu0 %v303_v28, %s988_s26  ;;  %v378_v32 = vpop.permute.xlu1 %377  ;;  %v408_v33 = vpop.permute.xlu0 %407 }
  0xbc   : > { %v385_v35 = vrot.slane %v378_v32, %v1147_v16  ;;  %v415_v42 = vrot.slane %v408_v33, %v1147_v16 }
  0xbe   : > { %309 = vrot.lane.b32.xlu1 %v304_v29, %s988_s26  ;;  %v387_v41 = vmul.f32 %v385_v35, %v245_v17  ;;  %v388_v45 = vmul.f32 %v385_v35, %v246_v22  ;;  %v417_v47 = vmul.f32 %v415_v42, %v245_v17  ;;  %v418_v50 = vmul.f32 %v415_v42, %v405_v46 }
  0xbf   : > { %335 = vrot.lane.b32.xlu0 %v331_v30, %s989_s28 }
  0xc0   : > { %v250_v37 = vpop.permute.xlu0 %249  ;;  %v437_v40 = vpop.permute.xlu1 %436 }
  0xc1   : > { %v257_v38 = vrot.slane %v250_v37, %v1147_v16  ;;  %v444_v48 = vrot.slane %v437_v40, %v1147_v16 }
  0xc2   : > { %337 = vrot.lane.b32.xlu1 %v332_v36, %s989_s28 }
  0xc3   : > { %363 = vrot.lane.b32.xlu0 %v359_v34, %s990_s8  ;;  %v1158_v43 = vmul.f32 %v257_v38, %v245_v17  ;;  %v260_v44 = vmul.f32 %v257_v38, %v246_v22  ;;  %v446_v51 = vmul.f32 %v444_v48, %v245_v17  ;;  %v447_v53 = vmul.f32 %v444_v48, %v405_v46 }
  0xc4   : > { %v1172_v58 = vpop.permute.xlu0 %495 }
  0xc5   : > { %v466_v49 = vpop.permute.xlu1 %465 }
  0xc6   : > { %365 = vrot.lane.b32.xlu1 %v360_v39, %s990_s8  ;;  %v473_v52 = vrot.slane %v466_v49, %v1147_v16  ;;  %s1202_s8 = scalar_lea.hbm %s1244_s5, %s791_s29 }
  0xc7   : > { %391 = vrot.lane.b32.xlu0 %v387_v41, %s991_s7 }
  0xc8   : > { %v476_v54 = vmul.f32 %v473_v52, %v405_v46  ;;  %v475_v55 = vmul.f32 %v473_v52, %v245_v17 }
  0xca   : > { %393 = vrot.lane.b32.xlu1 %v388_v45, %s991_s7  ;;  %s691_s7 = scalar_lea.sflag [#allocation4], %s1124_s13 }
  0xcb   : > { %421 = vrot.lane.b32.xlu0 %v417_v47, %s992_s9 }
  0xce   : > { %423 = vrot.lane.b32.xlu1 %v418_v50, %s992_s9  ;;  %s910_s9 = scalar_lea.vmem %s706_s16, 192 }
  0xcf   : > { %450 = vrot.lane.b32.xlu0 %v446_v51, %s993_s10  ;;  %p911_p11 = scmp.ne.s32.totalorder %s706_s16, %s910_s9 }
  0xd1   : > { %p912_p13 = pnand %p911_p11, %p1255_p12 }
  0xd2   : > { %452 = vrot.lane.b32.xlu1 %v447_v53, %s993_s10  ;;  %s914_s10 = sshll.u32 %s995_s22, 4  ;;  %s915_s10 = int_to_ptr.vmem [resolvable:$false] %s914_s10 }
  0xd3   : > { %481 = vrot.lane.b32.xlu0 %v476_v54, %s994_s11  ;;  %p913_p1 = pneg %p912_p13  ;;  %p917_p3 = scmp.lt.s32.totalorder %s706_s16, %s915_s10 }
  0xd6   : > { %479 = vrot.lane.b32.xlu1 %v475_v55, %s994_s11  ;;  %s916_s11 = scalar_lea.vmem %s915_s10, 384 }
  0xd7   : > { %547 = vperm.xlu0 %866, %v243_v56   ;;  %p918_p5 = scmp.lt.s32.totalorder %s916_s11, %s910_s9 }
  0xd9   : > { %p919_p8 = por %p918_p5, %p917_p3 }
  0xda   : > { %511 = vperm.xlu1 %865, %v243_v56  }
  0xdb   : > { %869 = vset.pattern.permute.xlu0 %v984_v8  ;;  %p920_p10 = pnand %p919_p8, %p913_p1 }
  0xdc   : > { %659 = vperm.xlu0 %869, %v244_v57  }
  0xde   : > { %867 = vset.pattern.permute.xlu1 %v979_v3 }
  0xdf   : > { %584 = vperm.xlu1 %867, %v243_v56  }
  0xe3   : > { %868 = vset.pattern.permute.xlu1 %v978_v1 }
  0xe4   : > { %621 = vperm.xlu1 %868, %v243_v56  }
 0x128   : > { %v279_v59 = vpop.permute.xlu1 %278 }
 0x129   : > { %v282_v5 = vrot.slane %v279_v59, 4 }
 0x12c   : > { %v281_v60 = vpop.permute.xlu1 %280 }
 0x12d   : > { %v308_v61 = vpop.permute.xlu0 %307  ;;  %v283_v2 = vrot.slane %v281_v60, 4  ;;  %v291_v17 = vadd.f32 %v281_v60, %v260_v44  ;;  %v503_v60 = vrot.slane %v1172_v58, %v1147_v16  ;;  %v593_v16 = vsub.s32 6, %v1144_v15 }
 0x12e   : > { %v311_v6 = vrot.slane %v308_v61, 4 }
 0x12f   : > { %v285_v3 = vsel %vm284_vm0, %v282_v5, %v283_v2 }
 0x130   : > { %v310_v62 = vpop.permute.xlu1 %309  ;;  %v287_v14 = vsel %vm286_vm1, %v279_v59, %v285_v3  ;;  %v552_v3 = vsub.s32 1, %v1144_v15 }
 0x131   : > { %v336_v63 = vpop.permute.xlu0 %335  ;;  %v312_v7 = vrot.slane %v310_v62, 4  ;;  %v319_v24 = vadd.f32 %v310_v62, %v291_v17  ;;  %v290_v25 = vadd.f32 %v287_v14, %v1158_v43 }
 0x132   : > { %v339_v11 = vrot.slane %v336_v63, 4 }
 0x133   : > { %v313_v10 = vsel %vm284_vm0, %v311_v6, %v312_v7  ;;  %v556_v6 = vsub.s32 5, %v1144_v15  ;;  %v522_v7 = vsub.s32 4, %v1144_v15 }
 0x134   : > { %v338_v0 = vpop.permute.xlu1 %337  ;;  %v315_v23 = vsel %vm314_vm2, %v308_v61, %v313_v10  ;;  %v626_v10 = vsub.s32 3, %v1144_v15 }
 0x135   : > { %v364_v4 = vpop.permute.xlu0 %363  ;;  %v340_v1 = vrot.slane %v338_v0, 4  ;;  %v347_v29 = vadd.f32 %v338_v0, %v319_v24  ;;  %v318_v31 = vadd.f32 %v315_v23, %v290_v25 }
 0x136   : > { %v367_v12 = vrot.slane %v364_v4, 4 }
 0x137   : > { %v341_v19 = vsel %vm284_vm0, %v339_v11, %v340_v1  ;;  %v518_v1 = vsub.s32 0, %v1144_v15 }
 0x138   : > { %v366_v8 = vpop.permute.xlu1 %365  ;;  %v343_v28 = vsel %vm342_vm3, %v336_v63, %v341_v19 }
 0x139   : > { %v392_v9 = vpop.permute.xlu0 %391  ;;  %v368_v13 = vrot.slane %v366_v8, 4  ;;  %v375_v36 = vadd.f32 %v366_v8, %v347_v29  ;;  %v346_v37 = vadd.f32 %v343_v28, %v318_v31 }
 0x13a   : > { %v395_v20 = vrot.slane %v392_v9, 4 }
 0x13b   : > { %v369_v26 = vsel %vm284_vm0, %v367_v12, %v368_v13 }
 0x13c   : > { %v394_v18 = vpop.permute.xlu1 %393  ;;  %v371_v35 = vsel %vm370_vm4, %v364_v4, %v369_v26 }
 0x13d   : > { %v396_v21 = vrot.slane %v394_v18, 4  ;;  %v422_v22 = vpop.permute.xlu0 %421  ;;  %v403_v42 = vadd.f32 %v394_v18, %v375_v36  ;;  %v374_v44 = vadd.f32 %v371_v35, %v346_v37 }
 0x13e   : > { %v425_v27 = vrot.slane %v422_v22, 4 }
 0x13f   : > { %v397_v32 = vsel %vm284_vm0, %v395_v20, %v396_v21 }
 0x140   : > { %v424_v30 = vpop.permute.xlu1 %423  ;;  %v399_v41 = vsel %vm398_vm6, %v392_v9, %v397_v32  ;;  %v589_v9 = vsub.s32 2, %v1144_v15 }
 0x141   : > { %v426_v33 = vrot.slane %v424_v30, 4  ;;  %v451_v34 = vpop.permute.xlu0 %450  ;;  %v402_v52 = vadd.f32 %v399_v41, %v374_v44 }
 0x142   : > { %v454_v40 = vrot.slane %v451_v34, 4 }
 0x143   : > { %v427_v38 = vsel %vm284_vm0, %v425_v27, %v426_v33  ;;  %v430_v39 = vsel %vm428_vm5, %v424_v30, %v426_v33  ;;  %v630_v27 = vsub.s32 7, %v1144_v15 }
 0x144   : > { %v453_v43 = vpop.permute.xlu1 %452  ;;  %v429_v47 = vsel %vm428_vm5, %v422_v22, %v427_v38  ;;  %v434_v48 = vadd.f32 %v430_v39, %v403_v42 }
 0x145   : > { %v455_v45 = vrot.slane %v453_v43, 4  ;;  %v482_v46 = vpop.permute.xlu0 %481  ;;  %v433_v57 = vadd.f32 %v429_v47, %v402_v52 }
 0x146   : > { %v484_v49 = vrot.slane %v482_v46, 4 }
 0x147   : > { %v456_v50 = vsel %vm284_vm0, %v454_v40, %v455_v45  ;;  %v459_v51 = vsel %vm457_vm7, %v453_v43, %v455_v45 }
 0x148   : > { %v463_v53 = vadd.f32 %v459_v51, %v434_v48  ;;  %v488_v54 = vsel %vm486_vm8, %v482_v46, %v484_v49  ;;  %v480_v55 = vpop.permute.xlu1 %479  ;;  %v458_v56 = vsel %vm457_vm7, %v451_v34, %v456_v50 }
 0x149   : > { %v483_v59 = vrot.slane %v480_v55, 4  ;;  %v462_v62 = vadd.f32 %v458_v56, %v433_v57 }
 0x14a   : > { %v492_v61 = vadd.f32 %v488_v54, %v463_v53 }
 0x14b   : > { %v485_v63 = vsel %vm284_vm0, %v483_v59, %v484_v49 }
 0x14c   : > { %v506_v0 = vadd.f32 %v503_v60, %v492_v61  ;;  %v487_v2 = vsel %vm486_vm8, %v480_v55, %v485_v63 }
 0x14d   : > { %v491_v4 = vadd.f32 %v487_v2, %v462_v62 }
 0x14e   : > { %v508_v8 = vmax.f32 %v506_v0, 0.0 }
 0x14f   : > { %v505_v5 = vadd.f32 %v503_v60, %v491_v4 }
 0x150   : > { %v561_v17 = vrot.slane %v508_v8, %v552_v3  ;;  %v527_v18 = vrot.slane %v508_v8, %v518_v1  ;;  %v598_v26 = vrot.slane %v508_v8, %v589_v9  ;;  %v635_v28 = vrot.slane %v508_v8, %v626_v10 }
 0x151   : > { %v507_v58 = vmax.f32 %v505_v5, 0.0 }
 0x152   : > { %v576_v29 = vrot.slane %v561_v17, %v552_v3  ;;  %v548_v30 = vpop.permute.xlu0 %547  ;;  %v542_v31 = vrot.slane %v527_v18, %v518_v1  ;;  %v613_v40 = vrot.slane %v598_v26, %v589_v9  ;;  %v650_v51 = vrot.slane %v635_v28, %v626_v10 }
 0x153   : > { %v553_v11 = vrot.slane %v507_v58, %v552_v3  ;;  %v557_v12 = vrot.slane %v507_v58, %v556_v6  ;;  %v519_v13 = vrot.slane %v507_v58, %v518_v1  ;;  %v523_v14 = vrot.slane %v507_v58, %v522_v7 }
 0x154   : > { %v590_v19 = vrot.slane %v507_v58, %v589_v9  ;;  %v594_v20 = vrot.slane %v507_v58, %v593_v16  ;;  %v627_v41 = vrot.slane %v507_v58, %v626_v10  ;;  %v631_v42 = vrot.slane %v507_v58, %v630_v27 }
 0x155   : > { %v568_v21 = vrot.slane %v553_v11, %v552_v3  ;;  %v572_v22 = vrot.slane %v557_v12, %v552_v3  ;;  %v512_v23 = vpop.permute.xlu1 %511  ;;  %v534_v24 = vrot.slane %v519_v13, %v518_v1  ;;  %v538_v25 = vrot.slane %v523_v14, %v518_v1 }
 0x156   : > { %v605_v32 = vrot.slane %v590_v19, %v589_v9  ;;  %v609_v33 = vrot.slane %v594_v20, %v589_v9  ;;  %v545_v38 = vmul.f32 %v542_v31, %v512_v23  ;;  %v579_v45 = vmul.f32 %v576_v29, %v548_v30 }
 0x157   : > { %v577_v34 = vmul.f32 %v568_v21, %v548_v30  ;;  %v578_v35 = vmul.f32 %v572_v22, %v548_v30  ;;  %v543_v36 = vmul.f32 %v534_v24, %v512_v23  ;;  %v544_v37 = vmul.f32 %v538_v25, %v512_v23  ;;  %v660_v60 = vpop.permute.xlu0 %659 }
 0x158   : > { %v582_v48 = vadd.f32 %v579_v45, %v545_v38  ;;  %v642_v49 = vrot.slane %v627_v41, %v626_v10  ;;  %v646_v50 = vrot.slane %v631_v42, %v626_v10 }
 0x159   : > { %v580_v15 = vadd.f32 %v577_v34, %v543_v36  ;;  %v581_v47 = vadd.f32 %v578_v35, %v544_v37 }
 0x15a   : > { %v585_v39 = vpop.permute.xlu1 %584 }
 0x15b   : > { %v614_v43 = vmul.f32 %v605_v32, %v585_v39  ;;  %v615_v44 = vmul.f32 %v609_v33, %v585_v39  ;;  %v616_v46 = vmul.f32 %v613_v40, %v585_v39 }
 0x15d   : > { %v617_v52 = vadd.f32 %v614_v43, %v580_v15  ;;  %v618_v53 = vadd.f32 %v615_v44, %v581_v47  ;;  %v619_v55 = vadd.f32 %v616_v46, %v582_v48 }
 0x15f   : > { %v622_v54 = vpop.permute.xlu1 %621 }
 0x160   : > { %v651_v56 = vmul.f32 %v642_v49, %v622_v54  ;;  %v652_v57 = vmul.f32 %v646_v50, %v622_v54  ;;  %v653_v59 = vmul.f32 %v650_v51, %v622_v54 }
 0x162   : > { %v654_v61 = vadd.f32 %v651_v56, %v617_v52  ;;  %v655_v62 = vadd.f32 %v652_v57, %v618_v53  ;;  %v656_v63 = vadd.f32 %v653_v59, %v619_v55 }
 0x164   : > { %v662_v0 = vadd.f32 %v660_v60, %v654_v61  ;;  %v663_v2 = vadd.f32 %v660_v60, %v655_v62  ;;  %v664_v4 = vadd.f32 %v660_v60, %v656_v63 }
 0x166   : > { %v783_v5 = vmul.f32 -1.442695, %v662_v0  ;;  %v784_v6 = vmul.f32 -1.442695, %v663_v2  ;;  %v785_v7 = vmul.f32 -1.442695, %v664_v4 }
 0x168   : > { %870 = vpow2.f32 %v783_v5 }
 0x169   : > { %872 = vpow2.f32 %v784_v6 }
 0x16a   : > { %874 = vpow2.f32 %v785_v7 }
 0x175   : > { %v871_v8 = vpop.eup %870 }
 0x176   : > { %v873_v3 = vpop.eup %872  ;;  %v674_v1 = vadd.f32 1.0, %v871_v8 }
 0x177   : > { %v875_v16 = vpop.eup %874  ;;  %v675_v58 = vadd.f32 1.0, %v873_v3 }
 0x178   : > { %v676_v9 = vadd.f32 1.0, %v875_v16  ;;  %876 = vrcp.f32 %v674_v1 }
 0x179   : > { %878 = vrcp.f32 %v675_v58 }
 0x17a   : > { %880 = vrcp.f32 %v676_v9 }
 0x185   : > { %v877_v10 = vpop.eup %876 }
 0x186   : > { %v879_v11 = vpop.eup %878 }
 0x187   : > { %v881_v12 = vpop.eup %880  ;;  %v685_v13 = vcombine.low %v877_v10, %v879_v11 }
 0x188   : > { %689 = vst.msk [vmem:[%s240_s15 + $0x8] sm:$0xf] %vm688_vm9, %v881_v12 }
 0x189   : > { %687 = vst [vmem:[%s240_s15] sm:$0xff] %v685_v13 }
 0x18a   : > { %923 = shalt.err (!%p920_p10)
}
 0x18b   : > { %s924_s17 = scalar_lea.hbm %s1202_s8, 192  ;;  %s928_s25 = scalar_lea.hbm %s1244_s5, 384 }
 0x18c   : > { %p925_p2 = scmp.ne.s32.totalorder %s1202_s8, %s924_s17  ;;  %p929_p7 = scmp.lt.s32.totalorder %s1202_s8, %s1244_s5 }
 0x18d   : > { %p930_p0 = scmp.lt.s32.totalorder %s928_s25, %s924_s17 }
 0x18e   : > { %p926_p4 = pnand %p925_p2, %p1255_p12 }
 0x18f   : > { %p931_p6 = por %p930_p0, %p929_p7 }
 0x190   : > { %p927_p9 = pneg %p926_p4 }
 0x192   : > { %p932_p11 = pnand %p931_p6, %p927_p9 }
 0x194   : > { %935 = shalt.err (!%p932_p11)
}
 0x195   : > { %794 = dma.vmem_to_hbm [thread:$0]  (%p1255_p12), %s706_s16, 192, %s1202_s8, %s691_s7  }
 0x196 PF: > { %s717_s29 = sand.u32 1, %s962_s18   ;;  %p1256_p13 = scmp.ne.s32.totalorder %s1250_s6, 0 }
 0x197   : > { %p1257_p1 = scmp.ge.s32.totalorder %s974_s21, 2  ;;  %s718_s15 = scalar_lea.sflag [#allocation4], %s717_s29 }
 0x199   : > { %p801_p3 = pnand %p1257_p1, %p1256_p13 }
 0x19b   : > { %p802_p5 = pneg %p801_p3 }
 0x19d   : > { %957 = dma.done.wait (%p802_p5), %s718_s15, 192  }
 0x19e   : > { %959 = vsyncadd (%p802_p5), %s718_s15, 4294967104  ;;  %p18_p8 = scmp.ge.s32.totalorder %s1051_s24, 4   ;;  %s1258_s18 = smov %s966_s19 }
 0x19f   : > { %s1259_s19 = smov %s970_s20  ;;  %s1260_s20 = smov %s1063_s27 }
 0x1a0   : > { %s1261_s21 = smov %s1051_s24  ;;  %20 = sbr.rel (!%p18_p8) target bundleno = 5 (0x5), region = 85 }
 0x1a5   :  { %723 = vsyncpa [#allocation3], 1 }
 0x1a6   :  { %725 = vsyncpa [#allocation3 + $0x1], 1 }
 0x1a7   :  { %726 = vsyncpa [#allocation4], 1 }
 0x1a8   :  { %728 = vsyncpa [#allocation4 + $0x1], 1 }

</bundles_post_ra>
